<compile_context>
chip_gen: v5e
topology: v5e:2x2
jax: 0.10.0
libtpu: 0.0.40
codegen_flags: <defaults>
</compile_context>

<pallas_src>
import functools

import jax
import jax.numpy as jnp
from jax.experimental import pallas as pl
from jax.experimental.pallas import tpu as pltpu


def _eca_kernel(x_ref, w_ref, o_ref, *, inv_hw, k, pad, use_roll, channels_last):
    # ---- spatial mean -> (b_tile, C) f32 partial (no big accumulator) ----
    xv = x_ref[...]
    if xv.dtype != jnp.float32:
        xv = xv.astype(jnp.float32)
    red_axis = 1 if channels_last else 2          # channels_last: (b, HW, C); else (b, C, HW)
    avg = jnp.sum(xv, axis=red_axis) * inv_hw     # (b_tile, C)

    b_tile, C = avg.shape

    # ---- 1D conv across channels (zero padding, no bias) ----
    if use_roll:
        # k shifted adds on the lane axis (XLU roll + edge masks); taps live in SMEM.
        c_idx = jax.lax.broadcasted_iota(jnp.int32, (b_tile, C), 1)
        y = jnp.zeros((b_tile, C), jnp.float32)
        for j in range(k):
            off = j - pad
            if off == 0:
                y = y + w_ref[j] * avg
            else:
                # shifted[c] = avg[c + off] (cyclic), then zero the wrapped lanes.
                shifted = pltpu.roll(avg, shift=(pad - j) % C, axis=1)
                valid = (c_idx + off >= 0) & (c_idx + off < C)
                y = y + w_ref[j] * jnp.where(valid, shifted, 0.0)
    else:
        # Small-C fallback: tiny banded (C, C) matmul on the MXU (VMEM-resident weight).
        y = jnp.dot(avg, w_ref[...], preferred_element_type=jnp.float32)

    scale = jax.nn.sigmoid(y).astype(o_ref.dtype)  # (b_tile, C)

    # ---- gate and apply in the input's native dtype (x_ref re-sliced, not kept live) ----
    if channels_last:
        o_ref[...] = x_ref[...] * scale[:, None, :]
    else:
        o_ref[...] = x_ref[...] * scale[:, :, None]


def _vmem_budget():
    """Generation-aware (block_budget, vmem_limit, physical_cap) in bytes."""
    cap = 64 * 1024 * 1024  # conservative default (v7x-sized) if query fails
    try:
        info = pltpu.get_tpu_info()
        cap = int(getattr(info, "vmem_capacity_bytes", cap))
    except Exception:
        pass
    if cap > 96 * 1024 * 1024:                     # v5e / v6e: 128 MiB physical VMEM
        return 12 * 1024 * 1024, 80 * 1024 * 1024, cap
    return 6 * 1024 * 1024, 48 * 1024 * 1024, cap  # v7x: 64 MiB physical VMEM


def eca_layer(x, conv_w, *, b_tile=None):
    """x: (B, C, H, W); conv_w: PyTorch Conv1d(1, 1, k) weight, shape (1, 1, k) or (k,)."""
    B, C, H, W = x.shape
    HW = H * W
    itemsize = jnp.dtype(x.dtype).itemsize

    w = jnp.asarray(conv_w).reshape(-1).astype(jnp.float32)   # (k,)
    k = int(w.shape[0])
    pad = (k - 1) // 2

    # Conv path: roll-adds whenever C is lane-friendly; tiny banded matmul otherwise.
    use_roll = (C % 128 == 0) and (C >= 128)
    # Layout: put C on lanes when HW is not lane-friendly but C is (e.g. 7x7 @ 2048 ch).
    channels_last = use_roll and (HW % 128 != 0)

    if channels_last:
        x3 = jnp.transpose(x, (0, 2, 3, 1)).reshape(B, HW, C)  # lane axis = C
        block_tail = (HW, C)
    else:
        x3 = x.reshape(B, C, HW)                                # lane axis = HW
        block_tail = (C, HW)

    if use_roll:
        w_arg = w                                               # (k,) taps -> SMEM
        w_spec = pl.BlockSpec(memory_space=pltpu.MemorySpace.SMEM)
        w_bytes = 4 * k
        conv_flops = 2 * B * C * k
    else:
        # Fold the k-tap conv (zero padding) into a small (C, C) banded matrix:
        #   y[b, c] = sum_{c'} avg[b, c'] * wband[c', c],  wband[c', c] = w[c' - c + pad]
        idx = jnp.arange(C)
        rel = idx[:, None] - idx[None, :] + pad
        valid = (rel >= 0) & (rel < k)
        w_arg = jnp.where(valid, w[jnp.clip(rel, 0, k - 1)], 0.0).astype(jnp.float32)
        w_spec = pl.BlockSpec((C, C), lambda i: (0, 0))          # VMEM-resident params
        w_bytes = 4 * C * C
        conv_flops = 2 * B * C * C

    # ---- generation-aware block sizing ----
    block_budget, vmem_limit, cap = _vmem_budget()
    row_bytes = max(C * HW * itemsize, 1)
    if b_tile is None:
        b_tile = max(1, min(B, block_budget // row_bytes))
        if B >= 2:
            # Keep >= 2 grid steps so both v7x TensorCores stream ("parallel" axis).
            b_tile = min(b_tile, -(-B // 2))
    b_tile = int(max(1, min(b_tile, B)))
    grid = (pl.cdiv(B, b_tile),)

    # Guard: 2 input + 2 output buffers + weight + f32 reduce transient must fit.
    block_bytes = b_tile * row_bytes
    need = 6 * block_bytes + w_bytes + (1 << 20)
    vmem_limit = int(min(max(vmem_limit, need), max(cap - 4 * 1024 * 1024, vmem_limit)))
    # TODO(synk): if a single (1, C, HW) row still exceeds physical VMEM, fall back to an
    # HW-tiled two-phase kernel (mean pass + gate pass) instead of just raising the limit.

    kernel = functools.partial(
        _eca_kernel, inv_hw=1.0 / float(HW), k=k, pad=pad,
        use_roll=use_roll, channels_last=channels_last)

    cost = pl.CostEstimate(
        flops=3 * B * C * HW + conv_flops,
        transcendentals=B * C,
        bytes_accessed=2 * B * C * HW * itemsize + w_bytes,
    )

    out = pl.pallas_call(
        kernel,
        out_shape=jax.ShapeDtypeStruct(x3.shape, x.dtype),
        grid_spec=pltpu.PrefetchScalarGridSpec(
            num_scalar_prefetch=0,
            grid=grid,
            in_specs=[
                pl.BlockSpec((b_tile,) + block_tail, lambda i: (i, 0, 0)),
                w_spec,
            ],
            out_specs=pl.BlockSpec((b_tile,) + block_tail, lambda i: (i, 0, 0)),
        ),
        compiler_params=pltpu.CompilerParams(
            dimension_semantics=("parallel",),
            vmem_limit_bytes=vmem_limit,
        ),
        cost_estimate=cost,
    )(x3, w_arg)

    if channels_last:
        return jnp.transpose(out.reshape(B, H, W, C), (0, 3, 1, 2))
    return out.reshape(B, C, H, W)


def eca_ref(x, conv_w):
    """Pure-JAX reference matching the PyTorch ECALayer.forward exactly."""
    B, C, H, W = x.shape
    w = jnp.asarray(conv_w).reshape(-1).astype(jnp.float32)
    k = w.shape[0]
    pad = (k - 1) // 2
    avg = jnp.mean(x.astype(jnp.float32), axis=(2, 3))           # (B, C)
    avg_p = jnp.pad(avg, ((0, 0), (pad, pad)))
    y = sum(w[j] * avg_p[:, j:j + C] for j in range(k))          # conv1d across C
    return x.astype(jnp.float32) * jax.nn.sigmoid(y)[:, :, None, None]


if __name__ == "__main__":
    import numpy as np

    key = jax.random.PRNGKey(0)

    def run_case(B, C, H, W, k_size):
        kk = jax.random.fold_in(key, B * 100000 + C * 1000 + H * 10 + k_size)
        kx, kw = jax.random.split(kk)
        x = jax.random.normal(kx, (B, C, H, W), jnp.float32)
        conv_w = jax.random.normal(kw, (1, 1, k_size), jnp.float32) * 0.5
        out = jax.block_until_ready(eca_layer(x, conv_w))
        ref = eca_ref(x, conv_w)
        np.testing.assert_allclose(np.asarray(out), np.asarray(ref), rtol=2e-5, atol=2e-5)

    # 1) Small-C fallback path (banded matmul), lane-dense HW, multi-step batch grid.
    run_case(2, 4, 16, 16, 3)
    # 2) Roll-conv path, channels-first layout (HW multiple of 128, C on lanes for the conv).
    run_case(2, 128, 16, 16, 3)
    # 3) Roll-conv path, channels-last layout (small HW -> lane axis = C), k=5.
    run_case(2, 128, 4, 4, 5)

    print("KERNEL_OK")
</pallas_src>

<mosaic_0001>
module attributes {stable_mosaic.version = 11 : i64} {
  func.func @_eca_kernel(%arg0: i32, %arg1: memref<1x4x256xf32, #tpu.memory_space<vmem>>, %arg2: memref<4x4xf32, #tpu.memory_space<vmem>>, %arg3: memref<1x4x256xf32, #tpu.memory_space<vmem>>) attributes {dimension_semantics = [#tpu.dimension_semantics<parallel>], iteration_bounds = array<i64: 2>, scalar_prefetch = 0 : i64, scratch_operands = 0 : i64, tpu.core_type = #tpu.core_type<tc>, window_params = [{transform_indices = @transform_0, window_bounds = array<i64: 1, 4, 256>}, {pipeline_mode = #tpu.pipeline_mode<synchronous>, transform_indices = @transform_1, window_bounds = array<i64: 4, 4>}, {transform_indices = @transform_2, window_bounds = array<i64: 1, 4, 256>}]} {
    %c0 = arith.constant 0 : index
    %c0_0 = arith.constant 0 : index
    %c0_1 = arith.constant 0 : index
    %0 = vector.load %arg1[%c0, %c0_0, %c0_1] : memref<1x4x256xf32, #tpu.memory_space<vmem>>, vector<1x4x256xf32>
    %cst = arith.constant dense<0.000000e+00> : vector<1x4xf32>
    %1 = vector.multi_reduction <add>, %0, %cst [2] : vector<1x4x256xf32> to vector<1x4xf32>
    %cst_2 = arith.constant 3.906250e-03 : f32
    %2 = vector.broadcast %cst_2 : f32 to vector<1x4xf32>
    %3 = arith.mulf %1, %2 : vector<1x4xf32>
    %c0_3 = arith.constant 0 : index
    %c0_4 = arith.constant 0 : index
    %4 = vector.load %arg2[%c0_3, %c0_4] : memref<4x4xf32, #tpu.memory_space<vmem>>, vector<4x4xf32>
    %cst_5 = arith.constant dense<0.000000e+00> : vector<1x4xf32>
    %5 = tpu.matmul %3, %4, %cst_5 {dimension_numbers = #tpu.dot_dimension_numbers<[1], [0], [0], [1], [0, 0, 1, 1], [], []>} : vector<1x4xf32>, vector<4x4xf32>, vector<1x4xf32> -> vector<1x4xf32>
    %6 = arith.negf %5 : vector<1x4xf32>
    %7 = math.exp %6 : vector<1x4xf32>
    %cst_6 = arith.constant 1.000000e+00 : f32
    %8 = vector.broadcast %cst_6 : f32 to vector<1x4xf32>
    %9 = arith.addf %8, %7 : vector<1x4xf32>
    %10 = arith.divf %8, %9 : vector<1x4xf32>
    %c0_7 = arith.constant 0 : index
    %c0_8 = arith.constant 0 : index
    %c0_9 = arith.constant 0 : index
    %11 = vector.load %arg1[%c0_7, %c0_8, %c0_9] : memref<1x4x256xf32, #tpu.memory_space<vmem>>, vector<1x4x256xf32>
    %12 = vector.shape_cast %10 : vector<1x4xf32> to vector<1x4x1xf32>
    %13 = vector.broadcast %12 : vector<1x4x1xf32> to vector<1x4x256xf32>
    %14 = arith.mulf %11, %13 : vector<1x4x256xf32>
    %c0_10 = arith.constant 0 : index
    %c0_11 = arith.constant 0 : index
    %c0_12 = arith.constant 0 : index
    %15 = vector.load %arg3[%c0_10, %c0_11, %c0_12] : memref<1x4x256xf32, #tpu.memory_space<vmem>>, vector<1x4x256xf32>
    tpu.vector_store %arg3[%c0_10, %c0_11, %c0_12], %14 {strides = array<i32>} : memref<1x4x256xf32, #tpu.memory_space<vmem>>, vector<1x4x256xf32>,
    return
  }
  func.func @transform_0(%arg0: i32) -> (i32, i32, i32) {
    %c0_i32 = arith.constant 0 : i32
    %c0_i32_0 = arith.constant 0 : i32
    %c0_i32_1 = arith.constant 0 : i32
    return %arg0, %c0_i32, %c0_i32_0 : i32, i32, i32
  }
  func.func @transform_1(%arg0: i32) -> (i32, i32) {
    %c0_i32 = arith.constant 0 : i32
    %c0_i32_0 = arith.constant 0 : i32
    %c0_i32_1 = arith.constant 0 : i32
    return %c0_i32, %c0_i32_0 : i32, i32
  }
  func.func @transform_2(%arg0: i32) -> (i32, i32, i32) {
    %c0_i32 = arith.constant 0 : i32
    %c0_i32_0 = arith.constant 0 : i32
    %c0_i32_1 = arith.constant 0 : i32
    return %arg0, %c0_i32, %c0_i32_0 : i32, i32, i32
  }
}

</mosaic_0001>

<bundles_post_ra>
// kernel: tpu_custom_call.1
= control target key start
LH: loop header
LB: loop body
LE: loop exit
PB: predicated region body
PF: predicated region fallthrough
CT: control target
= control target key end

     0   :  { %7 = vsyncpa [#allocation3], 0  ;;  %s728_s0 = inlined_call_operand.hbm [shape: f32[2,4,256], index: 0, kind: input, shape index: {}]   ;;  %s729_s1 = inlined_call_operand.hbm [shape: f32[4,4], index: 1, kind: input, shape index: {}]   ;;  %s730_s2 = inlined_call_operand.hbm [shape: f32[2,4,256], index: 2, kind: output, shape index: {}]  }
   0x1   :  { %9 = vsyncpa [#allocation3 + $0x1], 0 }
   0x2   :  { %10 = vsyncpa [#allocation6], 0 }
   0x3   :  { %11 = vsyncpa [#allocation4], 0 }
   0x4   :  { %13 = vsyncpa [#allocation4 + $0x1], 0  ;;  %s586_s9 = smov 0   ;;  %s588_s10 = smov 0  }
   0x5   :  { %s590_s11 = smov 0   ;;  %s592_s12 = smov 0  }
   0x6 LB: > { %s607_s13 = sadd.s32 4294967295, %s567_s12   ;;  %s353_s14 = sadd.s32 4294967294, %s567_s12   ;;  %s567_s12 = sphi %s592_s12, %s740_s12   ;;  %s563_s11 = sphi %s590_s11, %s739_s11   ;;  %s559_s10 = sphi %s588_s10, %s738_s10   ;;  %s555_s9 = sphi %s586_s9, %s737_s9  }
   0x7   : > { %p39_p0 = scmp.ne.s32.totalorder %s559_s10, %s555_s9  ;;  %p40_p1 = scmp.eq.s32.totalorder %s607_s13, 0 }
   0x8   : > { %p84_p2 = scmp.eq.s32.totalorder %s607_s13, 1  ;;  %p90_p3 = scmp.eq.s32.totalorder %s353_s14, 1 }
   0x9   : > { %p616_p4 = por %p40_p1, %p39_p0  ;;  %p354_p5 = scmp.ge.s32.totalorder %s567_s12, 1 }
   0xa   : > { %p621_p6 = por %p90_p3, %p39_p0  ;;  %p97_p7 = scmp.lt.s32.totalorder %s567_s12, 3 }
   0xb   : > { %s109_s19 = sshll.u32 %s729_s1, 4  ;;  %s569_s21 = smov [#allocation5]   ;;  %s110_s19 = int_to_ptr.hbm [resolvable:$true] %s109_s19 }
   0xc   : > { %p629_p8 = pnand %p354_p5, %p97_p7  ;;  %s111_s22 = sshll.u32 %s569_s21, 4  ;;  %s112_s22 = int_to_ptr.vmem [resolvable:$true] %s111_s22 }
   0xd   : > { %s639_s23 = sadd.s32 1, %s567_s12   ;;  %s26_s24 = sadd.s32 1, %s563_s11 }
   0xe   : > { %p382_p10 = pneg %p629_p8  ;;  %s23_s25 = ssub.s32 %s567_s12, %s639_s23 }
   0xf   : > { %p24_p12 = scmp.eq.s32.totalorder %s23_s25, 0  ;;  %p33_p13 = scmp.ne.s32.totalorder %s563_s11, %s559_s10 }
  0x10   : > { %p383_p11 = pnand %p382_p10, %p40_p1  ;;  %p34_p0 = scmp.eq.s32.totalorder %s567_s12, 0 }
  0x11   : > { %s648_s26 = scalar_select %p24_p12, %s563_s11, %s26_s24  }
  0x12   : > { %385 = dma.hbm_to_vmem [thread:$0]  (!%p383_p11), %s110_s19, 64, %s112_s22, [#allocation6]  }
  0x13   : > { %p652_p3 = por %p84_p2, %p33_p13  ;;  %p395_p5 = scmp.lt.s32.totalorder %s567_s12, 2 }
  0x14   : > { %s122_s28 = sand.u32 1, %s563_s11   ;;  %s372_s29 = sshll.u32 %s567_s12, 3 }
  0x15   : > { %p35_p7 = por %p34_p0, %p33_p13  ;;  %s357_s30 = sshll.u32 %s122_s28, 3 }
  0x16   : > { %s131_s5 = scalar_lea.hbm %s728_s0, %s372_s29  ;;  %s126_s7 = scalar_lea.vmem [#allocation2], %s357_s30 }
  0x17   : > { %s133_s6 = sshll.u32 %s131_s5, 4  ;;  %s135_s8 = sshll.u32 %s126_s7, 4  ;;  %s134_s6 = int_to_ptr.hbm [resolvable:$true] %s133_s6  ;;  %s136_s8 = int_to_ptr.vmem [resolvable:$true] %s135_s8 }
  0x18   : > { %p662_p10 = pnand %p395_p5, %p35_p7  ;;  %s123_s17 = scalar_lea.sflag [#allocation3], %s122_s28 }
  0x19   : > { %s467_s18 = sshra.s32 %s134_s6, 4  ;;  %s474_s24 = scalar_lea.hbm %s728_s0, 16  ;;  %s468_s18 = int_to_ptr.hbm [resolvable:$true] %s467_s18 }
  0x1a   : > { %s469_s19 = scalar_lea.hbm %s468_s18, 8  ;;  %p471_p11 = pneg %p662_p10 }
  0x1b   : > { %p470_p2 = scmp.ne.s32.totalorder %s468_s18, %s469_s19  ;;  %p475_p0 = scmp.lt.s32.totalorder %s468_s18, %s728_s0 }
  0x1c   : > { %p476_p5 = scmp.lt.s32.totalorder %s474_s24, %s469_s19 }
  0x1d   : > { %p472_p12 = pnand %p471_p11, %p470_p2 }
  0x1e   : > { %p477_p7 = por %p476_p5, %p475_p0 }
  0x1f   : > { %p473_p13 = pneg %p472_p12 }
  0x21   : > { %p478_p9 = pnand %p477_p7, %p473_p13 }
  0x23   : > { %481 = shalt.err (!%p478_p9)
}
  0x24   : > { %389 = dma.hbm_to_vmem [thread:$0]  (!%p662_p10), %s134_s6, 128, %s136_s8, %s123_s17  }
  0x25   : > { %144 = sbr.rel (%p629_p8) target bundleno = 455 (0x1c7), region = 28  ;;  %s679_s28 = sand.u32 (!%p629_p8), 1, %s559_s10  }
  0x26   : > { %s361_s30 = sshll.u32 (!%p629_p8), %s679_s28, 3  ;;  %s147_s3 = scalar_lea.sflag (!%p629_p8), [#allocation3], %s679_s28 }
  0x27   : > { %s150_s4 = scalar_lea.vmem (!%p629_p8), [#allocation2], %s361_s30 }
  0x2a   : > { %542 = dma.done.wait (%p616_p4), %s147_s3, 128  }
  0x2b   : > { %544 = vsyncadd (%p616_p4), %s147_s3, 4294967168 }
  0x2c   : > { %546 = dma.done.wait (%p40_p1), [#allocation6], 64  }
  0x2d   : > { %548 = vsyncadd (%p40_p1), [#allocation6], 4294967232  ;;  %v177_v0 = vld [vmem:[%s150_s4] sm:$0xff]  ;;  %vm184_vm0 = vcmask 1043456   ;;  %v191_v6 = vld [vmem:[#allocation5] sm:$0xf]  ;;  %v193_v7 = vlaneseq }
  0x2e   : > { %179 = vst [vmem:[#allocation1] ss:$2 sm:$0xff] %v177_v0  ;;  %364 = vmatpush.msk.msra.mxu0 %vm184_vm0, %v191_v6  ;;  %vm196_vm1 = vcmask 31744   ;;  %v570_v28 = vmov 839922192   ;;  %s373_s15 = sshll.u32 %s607_s13, 3 }
  0x2f   : > { %v194_v8 = vand.u32 127, %v193_v7  ;;  %v243_v12 = vshrl.u32 %v193_v7, 7  ;;  %v250_v29 = vunpack.c.l.s4 %v570_v28  ;;  %s268_s6 = scalar_lea.hbm %s730_s2, %s373_s15  ;;  %s176_s7 = scalar_lea.vmem [#allocation7], %s361_s30 }
  0x30   : > { %s270_s8 = sshll.u32 %s176_s7, 4  ;;  %s272_s14 = sshll.u32 %s268_s6, 4  ;;  %s271_s8 = int_to_ptr.vmem [resolvable:$true] %s270_s8  ;;  %s273_s14 = int_to_ptr.hbm [resolvable:$true] %s272_s14 }
  0x31   : > { %432 = vset.pattern.permute.xlu0 %v243_v12  ;;  %v251_v30 = vunpack.c.0.s8 %v250_v29  ;;  %s257_s17 = scalar_lea.sflag [#allocation4], %s679_s28  ;;  %s511_s18 = sshra.s32 %s273_s14, 4  ;;  %s512_s18 = int_to_ptr.hbm [resolvable:$true] %s511_s18 }
  0x32   : > { %s513_s13 = scalar_lea.hbm %s512_s18, 8  ;;  %s517_s22 = scalar_lea.hbm %s730_s2, 16 }
  0x33   : > { %p514_p1 = scmp.ne.s32.totalorder %s512_s18, %s513_s13  ;;  %p518_p9 = scmp.lt.s32.totalorder %s512_s18, %s730_s2 }
  0x34   : > { %p519_p10 = scmp.lt.s32.totalorder %s517_s22, %s513_s13 }
  0x35   : > { %v180_v1 = vld.sshfl [vmem:[#allocation1] sm:$0xff pattern:$0x75316420]  ;;  %v181_v2 = vld.sshfl [vmem:[#allocation1 + $0x8] sm:$0xff pattern:$0x75316420]  ;;  %p515_p4 = pnand %p514_p1, %p652_p3 }
  0x36   : > { %v185_v3 = vsel %vm184_vm0, %v180_v1, 0.0  ;;  %v186_v4 = vsel %vm184_vm0, %v181_v2, 0.0  ;;  %p520_p2 = por %p519_p10, %p518_p9 }
  0x37   : > { %v187_v5 = vadd.f32 %v186_v4, %v185_v3  ;;  %p516_p8 = pneg %p515_p4 }
  0x39   : > { %188 = vadd.xlane.f32.xlu0 %v187_v5  ;;  %p521_p11 = pnand %p520_p2, %p516_p8 }
  0xac   : > { %v189_v9 = vpop.xlane.xlu0 %188 }
  0xad   : > { %v190_v10 = vmul.f32 0.00390625, %v189_v9 }
  0xaf   : > { %v195_v11 = vperm.slane %v190_v10, %v194_v8 }
  0xb1   : > { %365 = vmatmul.msk.f32.vlgmr.msra.gmra.mxu0 %vm196_vm1, %v195_v11 }
 0x12e   : > { %v219_v13 = vpop.f32.mrf.mxu0 }
 0x12f   : > { %v366_v14 = vmul.f32 -1.442695, %v219_v13 }
 0x131   : > { %433 = vpow2.f32 %v366_v14 }
 0x137   : > { %v434_v15 = vpop.eup %433 }
 0x138   : > { %v225_v16 = vadd.f32 1.0, %v434_v15 }
 0x13a   : > { %435 = vrcp.f32 %v225_v16  ;;  %v237_v20 = vand.u32 2147483648, %v225_v16  ;;  %v235_v22 = vand.u32 2147483647, %v225_v16  ;;  %vm231_vm3 = vweird.f32 %v225_v16 }
 0x13c   : > { %v238_v24 = vor.u32 1.1754944e-38, %v237_v20  ;;  %vm236_vm5 = vcmp.eq.f32.partialorder %v235_v22, 8.507059e+37 }
 0x140   : > { %v436_v17 = vpop.eup %435 }
 0x141   : > { %v227_v18 = vmul.f32 %v436_v17, %v225_v16  ;;  %vm232_vm2 = vweird.f32 %v436_v17 }
 0x142   : > { %vm233_vm4 = vmor %vm231_vm3, %vm232_vm2 }
 0x143   : > { %v228_v19 = vsub.f32 1.0, %v227_v18 }
 0x145   : > { %v229_v21 = vmul.f32 %v436_v17, %v228_v19 }
 0x147   : > { %v230_v23 = vadd.f32 %v436_v17, %v229_v21 }
 0x149   : > { %v234_v25 = vsel %vm233_vm4, %v436_v17, %v230_v23 }
 0x14a   : > { %v239_v26 = vsel %vm236_vm5, %v238_v24, %v234_v25 }
 0x14b   : > { %v241_v27 = vperm.slane %v239_v26, 0 }
 0x14d   : > { %246 = vperm.xlu0 %432, %v241_v27  }
 0x1bf   : > { %v247_v31 = vpop.permute.xlu0 %246 }
 0x1c0   : > { %v252_v32 = vperm.slane %v247_v31, %v251_v30 }
 0x1c2   : > { %v254_v33 = vmul.f32 %v252_v32, %v177_v0 }
 0x1c4   : > { %255 = vst [vmem:[%s176_s7] sm:$0xff] %v254_v33 }
 0x1c5   : > { %524 = shalt.err (!%p521_p11)
}
 0x1c6   : > { %380 = dma.vmem_to_hbm [thread:$0]  (%p652_p3), %s271_s8, 128, %s273_s14, %s257_s17  }
 0x1c7 PF: > { %s284_s29 = sand.u32 1, %s555_s9   ;;  %p736_p12 = scmp.ge.s32.totalorder %s567_s12, 2 }
 0x1c8   : > { %s285_s28 = scalar_lea.sflag [#allocation4], %s284_s29 }
 0x1c9   : > { %p391_p13 = pnand %p736_p12, %p621_p6 }
 0x1cb   : > { %p392_p0 = pneg %p391_p13 }
 0x1cd   : > { %550 = dma.done.wait (%p392_p0), %s285_s28, 128  }
 0x1ce   : > { %552 = vsyncadd (%p392_p0), %s285_s28, 4294967168  ;;  %p16_p5 = scmp.ge.s32.totalorder %s639_s23, 4   ;;  %s737_s9 = smov %s559_s10 }
 0x1cf   : > { %s738_s10 = smov %s563_s11  ;;  %s739_s11 = smov %s648_s26 }
 0x1d0   : > { %s740_s12 = smov %s639_s23  ;;  %18 = sbr.rel (!%p16_p5) target bundleno = 6 (0x6), region = 77 }
 0x1d5   :  { %291 = vsyncpa [#allocation3], 1 }
 0x1d6   :  { %293 = vsyncpa [#allocation3 + $0x1], 1 }
 0x1d7   :  { %294 = vsyncpa [#allocation6], 1 }
 0x1d8   :  { %295 = vsyncpa [#allocation4], 1 }
 0x1d9   :  { %297 = vsyncpa [#allocation4 + $0x1], 1 }

</bundles_post_ra>
